<compile_context>
chip_gen: v7x
topology: tpu7x:2x2x1
jax: 0.10.0
libtpu: 0.0.40
codegen_flags: <defaults>
</compile_context>

<pallas_src>
import jax
import jax.numpy as jnp
from jax.experimental import pallas as pl
from jax.experimental.pallas import tpu as pltpu


def _srp_shuffle_kernel(x_ref, o_ref):
    """x block: (1, ct*scale, lt)  ->  o block: (1, ct, scale*lt)."""
    _, cs, lt = x_ref.shape
    _, ct, out_lt = o_ref.shape
    scale = cs // ct

    x = x_ref[0]                                 # (ct*scale, lt), lane-dense load
    # Channel split happens here on the VMEM block (the HBM array stays 3-D,
    # so no whole-tensor relayout is ever materialized in HBM).
    x3 = x.reshape(ct, scale, lt)                # (ct, scale, lt)
    # Lane interleave:  o[c, l*scale + r] = x3[c, r, l]
    # TODO(synk): for bf16/int8 with scale 2/4 a pack_elementwise/bitcast lane
    # pack would avoid the cross-lane relayout entirely; f32 (tested dtype)
    # has no packed fast path, so we rely on Mosaic's transpose+collapse.
    o_ref[0] = jnp.transpose(x3, (0, 2, 1)).reshape(ct, out_lt)


def _choose_tiles(B, out_c, scale, L, itemsize, budget_bytes):
    """Pick (ct, lt) block dims obeying the TPU (sublane, lane) tiling rules.

    The VMEM estimate covers double-buffered input + output tiles plus the
    worst-case padded staging of the in-kernel relayout, so the chosen tiles
    genuinely fit the scoped-VMEM limit on every generation.
    """
    sub = max(8, 32 // itemsize)       # sublane granule: 8 f32 / 16 bf16 / 32 int8
    lane = 128
    pad_scale = -(-scale // sub) * sub

    def est(ct, lt):
        tile = ct * scale * lt * itemsize                 # in tile == out tile (logical)
        split_stage = ct * pad_scale * lt * itemsize      # (ct, scale, lt): sublane-padded
        tpose_stage = ct * lt * max(scale, lane) * itemsize  # (ct, lt, scale): lane-padded worst case
        return 4 * tile + split_stage + tpose_stage       # 2x in + 2x out + staging

    # Lane-tile candidates: 128-multiples dividing L (dense vst), else full extent.
    if L >= lane and L % lane == 0:
        lt_cands = [t for t in range(lane, L + 1, lane) if L % t == 0]
    else:
        lt_cands = [L]
    # Channel-tile candidates: sublane-granule multiples dividing out_c, else full.
    if out_c >= sub and out_c % sub == 0:
        ct_cands = [c for c in range(sub, out_c + 1, sub) if out_c % c == 0]
    else:
        ct_cands = [out_c]

    # Prefer the widest lane tile that fits (lane-dense output stores are the
    # biggest single lever), then as many channels per step as the budget allows.
    ct, lt = ct_cands[0], lt_cands[0]      # smallest legal block as fallback
    done = False
    for t in reversed(lt_cands):
        for c in reversed(ct_cands):
            if est(c, t) <= budget_bytes:
                ct, lt = c, t
                done = True
                break
        if done:
            break

    # v7x has 2 TensorCores: make sure some parallel grid axis has >= 2 blocks.
    if B * (out_c // ct) * (L // lt) == 1:
        smaller_ct = [c for c in ct_cands if c < ct]
        smaller_lt = [t for t in lt_cands if t < lt]
        if smaller_ct:
            ct = smaller_ct[-1]
        elif smaller_lt:
            lt = smaller_lt[-1]

    return ct, lt, est(ct, lt)


def srp_shuffle(x, scale, *, tile_budget_bytes=10 * 1024 * 1024,
                vmem_limit_bytes=None):
    """Pallas implementation of SRPShuffle.forward.

    x: (B, C, L) array, C must be divisible by `scale`.
    returns: (B, C // scale, scale * L) array, same dtype.
    """
    B, C, L = x.shape
    if C % scale != 0:
        raise Exception("Check input channels")
    if scale == 1:
        return x                                    # identity permutation
    out_c = C // scale
    out_l = scale * L

    itemsize = jnp.dtype(x.dtype).itemsize
    ct, lt, est_bytes = _choose_tiles(B, out_c, scale, L, itemsize,
                                      tile_budget_bytes)
    grid = (B, out_c // ct, L // lt)

    # Only raise the scoped-VMEM limit when an untileable shape actually needs
    # it (defaults keep the estimate under the 16 MiB v5e scoped default).
    if vmem_limit_bytes is None and est_bytes > 14 * 1024 * 1024:
        vmem_limit_bytes = min(56 * 1024 * 1024, est_bytes + 8 * 1024 * 1024)

    return pl.pallas_call(
        _srp_shuffle_kernel,
        out_shape=jax.ShapeDtypeStruct((B, out_c, out_l), x.dtype),
        grid=grid,
        in_specs=[pl.BlockSpec((1, ct * scale, lt), lambda b, c, l: (b, c, l))],
        out_specs=pl.BlockSpec((1, ct, scale * lt), lambda b, c, l: (b, c, l)),
        compiler_params=pltpu.CompilerParams(
            dimension_semantics=("parallel", "parallel", "parallel"),
            vmem_limit_bytes=vmem_limit_bytes,
        ),
    )(x)


def _srp_shuffle_ref(x, scale):
    # Pure-JAX reference mirroring the PyTorch module exactly.
    B, C, L = x.shape
    out_c = C // scale
    xv = x.reshape(B, out_c, scale, L)
    xp = jnp.transpose(xv, (0, 1, 3, 2))
    return xp.reshape(B, out_c, scale * L)


if __name__ == "__main__":
    key = jax.random.PRNGKey(0)

    # Case 1: small shape matching the module's expected (B, C, L) input.
    B, C, L, scale = 2, 4, 16, 2
    x = jax.random.normal(key, (B, C, L), dtype=jnp.float32)
    out = jax.block_until_ready(srp_shuffle(x, scale))
    ref = _srp_shuffle_ref(x, scale)
    assert out.shape == (B, C // scale, scale * L), out.shape
    assert out.dtype == x.dtype
    assert jnp.array_equal(out, ref), "Pallas output != reference (case 1)"

    # Case 2: lane-tiled path (tiny budget forces L tiling; lanes stay 128-dense).
    x2 = jax.random.normal(jax.random.PRNGKey(0), (2, 16, 1024), dtype=jnp.float32)
    out2 = jax.block_until_ready(
        srp_shuffle(x2, 4, tile_budget_bytes=256 * 1024))
    assert out2.shape == (2, 4, 4096), out2.shape
    assert jnp.array_equal(out2, _srp_shuffle_ref(x2, 4)), \
        "Pallas output != reference (case 2)"

    # Case 3: channel-tiled path (out_c multiple of 8) with B == 1.
    x3 = jax.random.normal(jax.random.PRNGKey(0), (1, 64, 512), dtype=jnp.float32)
    out3 = jax.block_until_ready(
        srp_shuffle(x3, 2, tile_budget_bytes=512 * 1024))
    assert out3.shape == (1, 32, 1024), out3.shape
    assert jnp.array_equal(out3, _srp_shuffle_ref(x3, 2)), \
        "Pallas output != reference (case 3)"

    print("KERNEL_OK")
</pallas_src>

<mosaic_0001>
module attributes {stable_mosaic.version = 11 : i64} {
  func.func @_srp_shuffle_kernel(%arg0: i32, %arg1: i32, %arg2: i32, %arg3: memref<1x4x16xf32, #tpu.memory_space<vmem>>, %arg4: memref<1x2x32xf32, #tpu.memory_space<vmem>>) attributes {dimension_semantics = [#tpu.dimension_semantics<parallel>, #tpu.dimension_semantics<parallel>, #tpu.dimension_semantics<parallel>], iteration_bounds = array<i64: 2, 1, 1>, scalar_prefetch = 0 : i64, scratch_operands = 0 : i64, tpu.core_type = #tpu.core_type<tc>, window_params = [{transform_indices = @transform_0, window_bounds = array<i64: 1, 4, 16>}, {transform_indices = @transform_1, window_bounds = array<i64: 1, 2, 32>}]} {
    %c0 = arith.constant 0 : index
    %c0_0 = arith.constant 0 : index
    %c0_1 = arith.constant 0 : index
    %0 = vector.load %arg3[%c0, %c0_0, %c0_1] : memref<1x4x16xf32, #tpu.memory_space<vmem>>, vector<1x4x16xf32>
    %1 = vector.shape_cast %0 : vector<1x4x16xf32> to vector<4x16xf32>
    %2 = vector.shape_cast %1 : vector<4x16xf32> to vector<2x2x16xf32>
    %3 = tpu.transpose %2, [0, 2, 1] : vector<2x2x16xf32> -> vector<2x16x2xf32>
    %4 = vector.shape_cast %3 : vector<2x16x2xf32> to vector<2x32xf32>
    %c0_2 = arith.constant 0 : index
    %c0_3 = arith.constant 0 : index
    %c0_4 = arith.constant 0 : index
    %5 = vector.load %arg4[%c0_2, %c0_3, %c0_4] : memref<1x2x32xf32, #tpu.memory_space<vmem>>, vector<1x2x32xf32>
    %6 = vector.shape_cast %5 : vector<1x2x32xf32> to vector<2x32xf32>
    %7 = vector.shape_cast %4 : vector<2x32xf32> to vector<1x2x32xf32>
    tpu.vector_store %arg4[%c0_2, %c0_3, %c0_4], %7 {strides = array<i32>} : memref<1x2x32xf32, #tpu.memory_space<vmem>>, vector<1x2x32xf32>,
    return
  }
  func.func @transform_0(%arg0: i32, %arg1: i32, %arg2: i32) -> (i32, i32, i32) {
    %c0_i32 = arith.constant 0 : i32
    return %arg0, %arg1, %arg2 : i32, i32, i32
  }
  func.func @transform_1(%arg0: i32, %arg1: i32, %arg2: i32) -> (i32, i32, i32) {
    %c0_i32 = arith.constant 0 : i32
    return %arg0, %arg1, %arg2 : i32, i32, i32
  }
}

</mosaic_0001>

<bundles_post_ra>
// kernel: tpu_custom_call.1
= control target key start
LH: loop header
LB: loop body
LE: loop exit
PB: predicated region body
PF: predicated region fallthrough
CT: control target
= control target key end

     0   :  { %6 = vsyncpa [#allocation3], 0  ;;  %s989_s0 = inlined_call_operand.hbm [shape: f32[2,4,16], index: 0, kind: input, shape index: {}]   ;;  %s990_s1 = inlined_call_operand.hbm [shape: f32[2,2,32], index: 1, kind: output, shape index: {}]  }
   0x1   :  { %8 = vsyncpa [#allocation3 + $0x1], 0 }
   0x2   :  { %9 = vsyncpa [#allocation4], 0 }
   0x3   :  { %11 = vsyncpa [#allocation4 + $0x1], 0  ;;  %s800_s6 = smov 0   ;;  %s802_s7 = smov 0  }
   0x4   :  { %s804_s8 = smov 0   ;;  %s806_s9 = smov 0  }
   0x5   :  { %s808_s10 = smov 0   ;;  %s810_s11 = smov 0  }
   0x6 LB: > { %s562_s12 = sadd.s32 4294967295, %s768_s11   ;;  %s563_s13 = sadd.s32 4294967294, %s768_s11   ;;  %s768_s11 = sphi %s810_s11, %s17_s11   ;;  %s764_s10 = sphi %s808_s10, %s1006_s10   ;;  %s760_s9 = sphi %s806_s9, %s1005_s9   ;;  %s756_s8 = sphi %s804_s8, %s1004_s8   ;;  %s752_s7 = sphi %s802_s7, %s1003_s7   ;;  %s748_s6 = sphi %s800_s6, %s1002_s6  }
   0x7   : > { %s36_s14 = sadd.s32 1, %s764_s10  ;;  %s47_s15 = sadd.s32 1, %s756_s8 }
   0x8   : > { %p38_p0 = scmp.ge.s32.totalorder %s36_s14, 2  ;;  %p54_p1 = scmp.ne.s32.totalorder %s756_s8, %s752_s7 }
   0x9   : > { %p55_p2 = scmp.eq.s32.totalorder %s768_s11, 0  ;;  %p60_p3 = scmp.ne.s32.totalorder %s752_s7, %s748_s6 }
   0xa   : > { %s1008_s14 = smov (%p38_p0, %s36_s14), 0  ;;  %p61_p5 = scmp.eq.s32.totalorder %s562_s12, 0 }
   0xb   : > { %p841_p4 = por %p55_p2, %p54_p1  ;;  %s40_s17 = ssub.s32 %s764_s10, %s1008_s14 }
   0xc   : > { %p88_p6 = scmp.eq.s32.totalorder %s562_s12, 1  ;;  %p45_p7 = scmp.eq.s32.totalorder %s40_s17, 0 }
   0xd   : > { %p847_p8 = por %p61_p5, %p60_p3  ;;  %p94_p10 = scmp.eq.s32.totalorder %s563_s13, 1 }
   0xe   : > { %p851_p9 = por %p88_p6, %p54_p1  ;;  %p588_p13 = scmp.lt.s32.totalorder %s768_s11, 2 }
   0xf   : > { %s856_s20 = scalar_select %p45_p7, %s756_s8, %s47_s15  }
  0x10   : > { %s994_s19 = scalar_select %p851_p9, 1, 0 }
  0x11   : > { %p858_p11 = por %p94_p10, %p60_p3  ;;  %s114_s22 = sand.u32 1, %s756_s8  }
  0x12   : > { %s566_s23 = sshll.u32 %s114_s22, 2  ;;  %s567_s24 = sshll.u32 %s764_s10, 6 }
  0x13   : > { %s995_s21 = scalar_select %p858_p11, 1, 0 }
  0x14   : > { %s869_s27 = scalar_lea.hbm %s989_s0, %s567_s24  ;;  %s118_s28 = scalar_lea.vmem [#allocation2], %s566_s23 }
  0x15   : > { %s127_s29 = sshll.u32 %s118_s28, 4  ;;  %p875_p0 = pnand %p588_p13, %p841_p4  ;;  %s871_s29 = int_to_ptr.vmem [resolvable:$true] %s127_s29 }
  0x16   : > { %s115_s2 = scalar_lea.sflag [#allocation3], %s114_s22  ;;  %s656_s3 = scalar_lea.hbm %s869_s27, 64 }
  0x17   : > { %p657_p3 = scmp.ne.s32.totalorder %s869_s27, %s656_s3  ;;  %p658_p5 = pneg %p875_p0 }
  0x18   : > { %s661_s12 = scalar_lea.hbm %s989_s0, 128  ;;  %p662_p4 = scmp.lt.u32.totalorder %s869_s27, %s989_s0 }
  0x19   : > { %p659_p6 = pnand %p658_p5, %p657_p3  ;;  %p663_p10 = scmp.lt.u32.totalorder %s661_s12, %s656_s3 }
  0x1a   : > { %p665_p12 = scmp.lt.u32.totalorder %s656_s3, %s869_s27 }
  0x1b   : > { %p660_p7 = pneg %p659_p6  ;;  %p664_p13 = por %p663_p10, %p662_p4 }
  0x1d   : > { %p666_p1 = por %p665_p12, %p664_p13 }
  0x1f   : > { %p667_p2 = pnand %p666_p1, %p660_p7 }
  0x21   : > { %670 = shalt.err (!%p667_p2)
}
  0x22   : > { %s671_s16 = scalar_lea.vmem %s871_s29, 64  ;;  %s770_s17 = smov [#allocation2]  }
  0x23   : > { %p672_p3 = scmp.ne.s32.totalorder %s871_s29, %s671_s16  ;;  %s676_s22 = sshll.u32 %s770_s17, 4  ;;  %s677_s22 = int_to_ptr.vmem [resolvable:$false] %s676_s22 }
  0x24   : > { %s678_s23 = scalar_lea.vmem %s677_s22, 128  ;;  %p679_p9 = scmp.lt.s32.totalorder %s871_s29, %s677_s22 }
  0x25   : > { %p674_p6 = pnand %p672_p3, %p658_p5  ;;  %p680_p4 = scmp.lt.s32.totalorder %s678_s23, %s671_s16 }
  0x27   : > { %p675_p11 = pneg %p674_p6  ;;  %p681_p10 = por %p680_p4, %p679_p9 }
  0x29   : > { %p682_p12 = pnand %p681_p10, %p675_p11 }
  0x2b   : > { %685 = shalt.err (!%p682_p12)
}
  0x2c   : > { %583 = dma.hbm_to_vmem [thread:$0]  (!%p875_p0), %s869_s27, 64, %s871_s29, %s115_s2  }
  0x2d   : > { %p997_p1 = scmp.lt.s32.totalorder %s768_s11, 3  ;;  %p998_p2 = scmp.ge.s32.totalorder %s768_s11, 1 }
  0x2f   : > { %p133_p5 = pnand %p998_p2, %p997_p1 }
  0x30   : > { %s911_s24 = sand.u32 (!%p133_p5), 1, %s752_s7  }
  0x31   : > { %136 = sbr.rel (%p133_p5) target bundleno = 383 (0x17f), region = 24  ;;  %s569_s25 = sshll.u32 (!%p133_p5), %s911_s24, 2 }
  0x32   : > { %s139_s26 = scalar_lea.sflag (!%p133_p5), [#allocation3], %s911_s24  ;;  %s142_s28 = scalar_lea.vmem (!%p133_p5), [#allocation2], %s569_s25 }
  0x38   : > { %739 = dma.done.wait (%p847_p8), %s139_s26, 64  }
  0x39   : > { %741 = vsyncadd (%p847_p8), %s139_s26, 4294967232  ;;  %v571_v0 = vld.sshfl [vmem:[%s142_s28] sm:$0x33 pattern:$0x76325410]  ;;  %v241_v4 = vlaneseq  ;;  %v773_v13 = vmov 0.0  }
  0x3a   : > { %173 = vxpose.xlu0.b32.start.end [1/1] (short) (narrow) %v571_v0, 16  ;;  %v170_v1 = vcombine.high %v571_v0, %v571_v0  ;;  %v771_v2 = vmov 1983009808   ;;  %v772_v8 = vmov 1934713408   ;;  %s774_s18 = smov 4  }
  0x3b   : > { %v239_v3 = vunpack.c.l.s4 %v771_v2  ;;  %v242_v7 = vshrl.u32 %v241_v4, 7  ;;  %v270_v9 = vunpack.c.l.s4 %v772_v8  ;;  %s775_s27 = smov 8   ;;  %s776_s29 = smov 2   ;;  %vm429_vm0 = vcmask 15360  }
  0x3c   : > { %s777_s30 = smov 6   ;;  %s778_s2 = smov 12   ;;  %vm431_vm1 = vcmask 31744   ;;  %vm433_vm2 = vcmask 48128   ;;  %vm435_vm3 = vcmask 64512   ;;  %vm437_vm4 = vcmask 80896  }
  0x3d   : > { %v240_v6 = vunpack.c.0.s8 %v239_v3  ;;  %v271_v12 = vunpack.c.0.s8 %v270_v9  ;;  %s779_s3 = smov 10   ;;  %s780_s4 = smov 14   ;;  %vm439_vm5 = vcmask 97280   ;;  %vm441_vm6 = vcmask 113664  }
  0x3e   : > { %s781_s5 = smov 16   ;;  %s782_s12 = smov 20   ;;  %vm443_vm7 = vcmask 130048   ;;  %vm445_vm8 = vcmask 146432   ;;  %vm447_vm9 = vcmask 162816   ;;  %vm449_vm10 = vcmask 179200  }
  0x3f   : > { %205 = vxpose.xlu0.b32.start.end [1/1] (short) (narrow) %v170_v1, 16  ;;  %v243_v11 = vsub.s32 %v240_v6, %v242_v7  ;;  %v274_v19 = vsub.s32 %v271_v12, %v242_v7  ;;  %s783_s13 = smov 18   ;;  %s784_s15 = smov 22   ;;  %vm451_vm11 = vcmask 195584   ;;  %vm453_vm12 = vcmask 211968  }
  0x40   : > { %s785_s16 = smov 24   ;;  %s786_s17 = smov 28   ;;  %vm455_vm13 = vcmask 228352   ;;  %vm457_vm14 = vcmask 244736   ;;  %vm459_vm15 = vcmask 254976  }
  0x41   : > { %s787_s22 = smov 26   ;;  %s788_s23 = smov 30  }
  0x42   : > { %s570_s25 = sshll.u32 %s911_s24, 1  ;;  %s573_s26 = sshll.u32 %s760_s9, 5 }
  0x43   : > { %s160_s28 = scalar_lea.vmem [#allocation5], %s570_s25  ;;  %p999_p9 = scmp.ne.s32.totalorder %s994_s19, 0 }
  0xba   : > { %v189_v5 = vpop.trf.xlu0 }
  0xbb   : > { %v237_v14 = vcombine.high %v189_v5, %v773_v13  ;;  %v244_v16 = vrot.slane %v189_v5, %v243_v11 }
  0xbd   : > { %v251_v20 = vrot.slane %v237_v14, %v243_v11 }
  0xbe   : > { %v190_v10 = vpop.trf.xlu0 }
  0xbf   : > { %v310_v35 = vrot.slane %v190_v10, %v243_v11  ;;  %v303_v42 = vcombine.high %v190_v10, %v773_v13 }
  0xc1   : > { %v317_v45 = vrot.slane %v303_v42, %v243_v11 }
  0xc2   : > { %v221_v15 = vpop.trf.xlu0 }
  0xc3   : > { %v252_v17 = vcombine.high %v221_v15, %v773_v13  ;;  %v259_v18 = vrot.slane %v221_v15, %v243_v11 }
  0xc5   : > { %v266_v21 = vrot.slane %v252_v17, %v243_v11  ;;  %v267_v22 = vcombine.low %v244_v16, %v259_v18  ;;  %v268_v23 = vcombine.high %v244_v16, %v259_v18 }
  0xc6   : > { %v222_v32 = vpop.trf.xlu0 }
  0xc7   : > { %v283_v24 = vcombine.low %v251_v20, %v266_v21  ;;  %v921_v25 = vrot.slane %v267_v22, %v274_v19  ;;  %v282_v26 = vrot.slane %v268_v23, %v274_v19  ;;  %v284_v29 = vcombine.high %v251_v20, %v266_v21 }
  0xc8   : > { %v325_v33 = vrot.slane %v222_v32, %v243_v11  ;;  %v318_v40 = vcombine.high %v222_v32, %v773_v13 }
  0xc9   : > { %v291_v27 = vrot.slane %v283_v24, %v274_v19  ;;  %374 = vrot.lane.b32.xlu1 %v282_v26, %s774_s18  ;;  %v299_v28 = vcombine.high %v921_v25, %v773_v13  ;;  %v300_v30 = vcombine.high %v282_v26, %v773_v13  ;;  %v298_v31 = vrot.slane %v284_v29, %v274_v19  ;;  %s477_s18 = sshll.u32 %s160_s28, 4  ;;  %s942_s18 = int_to_ptr.vmem [resolvable:$true] %s477_s18 }
  0xca   : > { %v333_v36 = vcombine.low %v310_v35, %v325_v33  ;;  %v334_v38 = vcombine.high %v310_v35, %v325_v33  ;;  %v332_v43 = vrot.slane %v318_v40, %v243_v11  ;;  %s686_s9 = scalar_lea.vmem %s942_s18, 32 }
  0xcb   : > { %382 = vrot.lane.b32.xlu0 %v291_v27, %s775_s27  ;;  %v301_v34 = vcombine.high %v291_v27, %v773_v13  ;;  %v302_v37 = vcombine.high %v298_v31, %v773_v13  ;;  %p687_p8 = scmp.ne.s32.totalorder %s942_s18, %s686_s9 }
  0xcc   : > { %v341_v39 = vrot.slane %v333_v36, %v274_v19  ;;  %v348_v41 = vrot.slane %v334_v38, %v274_v19  ;;  %v349_v46 = vcombine.low %v317_v45, %v332_v43  ;;  %v350_v48 = vcombine.high %v317_v45, %v332_v43 }
  0xcd   : > { %370 = vrot.lane.b32.xlu1 %v299_v28, %s776_s29  ;;  %p688_p11 = pnand %p687_p8, %p999_p9 }
  0xce   : > { %v365_v44 = vcombine.high %v341_v39, %v773_v13  ;;  %v366_v47 = vcombine.high %v348_v41, %v773_v13  ;;  %v357_v49 = vrot.slane %v349_v46, %v274_v19  ;;  %v364_v50 = vrot.slane %v350_v48, %v274_v19 }
  0xcf   : > { %p689_p0 = pneg %p688_p11 }
  0xd0   : > { %v367_v51 = vcombine.high %v357_v49, %v773_v13  ;;  %v368_v52 = vcombine.high %v364_v50, %v773_v13 }
  0xd1   : > { %378 = vrot.lane.b32.xlu1 %v300_v30, %s777_s30  ;;  %s940_s30 = scalar_lea.hbm %s990_s1, %s573_s26 }
  0xd5   : > { %390 = vrot.lane.b32.xlu1 %v298_v31, %s778_s2  ;;  %s462_s2 = scalar_lea.sflag [#allocation4], %s911_s24 }
  0xd9   : > { %386 = vrot.lane.b32.xlu1 %v301_v34, %s779_s3  ;;  %s789_s3 = smov [#allocation5]  }
  0xdd   : > { %394 = vrot.lane.b32.xlu1 %v302_v37, %s780_s4  ;;  %s690_s4 = sshll.u32 %s789_s3, 4  ;;  %s691_s4 = int_to_ptr.vmem [resolvable:$false] %s690_s4 }
  0xde   : > { %p693_p7 = scmp.lt.s32.totalorder %s942_s18, %s691_s4 }
  0xe1   : > { %398 = vrot.lane.b32.xlu1 %v341_v39, %s781_s5  ;;  %s692_s5 = scalar_lea.vmem %s691_s4, 64 }
  0xe2   : > { %p694_p13 = scmp.lt.s32.totalorder %s692_s5, %s686_s9 }
  0xe4   : > { %p695_p3 = por %p694_p13, %p693_p7 }
  0xe5   : > { %406 = vrot.lane.b32.xlu1 %v348_v41, %s782_s12 }
  0xe6   : > { %p696_p6 = pnand %p695_p3, %p689_p0 }
  0xe9   : > { %402 = vrot.lane.b32.xlu1 %v365_v44, %s783_s13 }
  0xed   : > { %410 = vrot.lane.b32.xlu1 %v366_v47, %s784_s15 }
  0xf1   : > { %414 = vrot.lane.b32.xlu1 %v357_v49, %s785_s16 }
  0xf5   : > { %422 = vrot.lane.b32.xlu1 %v364_v50, %s786_s17 }
  0xf9   : > { %418 = vrot.lane.b32.xlu1 %v367_v51, %s787_s22 }
  0xfd   : > { %426 = vrot.lane.b32.xlu1 %v368_v52, %s788_s23 }
 0x13b   : > { %v375_v53 = vpop.permute.xlu1 %374 }
 0x13d   : > { %v383_v1 = vpop.permute.xlu0 %382 }
 0x13f   : > { %v371_v54 = vpop.permute.xlu1 %370 }
 0x140   : > { %v430_v61 = vsel %vm429_vm0, %v921_v25, %v371_v54 }
 0x141   : > { %v432_v62 = vsel %vm431_vm1, %v430_v61, %v375_v53 }
 0x143   : > { %v379_v55 = vpop.permute.xlu1 %378 }
 0x144   : > { %v434_v0 = vsel %vm433_vm2, %v432_v62, %v379_v55 }
 0x145   : > { %v436_v2 = vsel %vm435_vm3, %v434_v0, %v383_v1 }
 0x147   : > { %v391_v56 = vpop.permute.xlu1 %390 }
 0x14b   : > { %v387_v57 = vpop.permute.xlu1 %386 }
 0x14c   : > { %v438_v4 = vsel %vm437_vm4, %v436_v2, %v387_v57 }
 0x14d   : > { %v440_v5 = vsel %vm439_vm5, %v438_v4, %v391_v56 }
 0x14f   : > { %v395_v58 = vpop.permute.xlu1 %394 }
 0x150   : > { %v442_v7 = vsel %vm441_vm6, %v440_v5, %v395_v58 }
 0x153   : > { %v399_v59 = vpop.permute.xlu1 %398 }
 0x154   : > { %v444_v8 = vsel %vm443_vm7, %v442_v7, %v399_v59 }
 0x157   : > { %v407_v60 = vpop.permute.xlu1 %406 }
 0x15b   : > { %v403_v63 = vpop.permute.xlu1 %402 }
 0x15c   : > { %v446_v9 = vsel %vm445_vm8, %v444_v8, %v403_v63 }
 0x15d   : > { %v448_v11 = vsel %vm447_vm9, %v446_v9, %v407_v60 }
 0x15f   : > { %v411_v3 = vpop.permute.xlu1 %410 }
 0x160   : > { %v450_v12 = vsel %vm449_vm10, %v448_v11, %v411_v3 }
 0x163   : > { %v415_v6 = vpop.permute.xlu1 %414 }
 0x164   : > { %v452_v13 = vsel %vm451_vm11, %v450_v12, %v415_v6 }
 0x167   : > { %v423_v10 = vpop.permute.xlu1 %422 }
 0x16b   : > { %v419_v14 = vpop.permute.xlu1 %418 }
 0x16c   : > { %v454_v15 = vsel %vm453_vm12, %v452_v13, %v419_v14 }
 0x16d   : > { %v456_v17 = vsel %vm455_vm13, %v454_v15, %v423_v10 }
 0x16f   : > { %v427_v16 = vpop.permute.xlu1 %426 }
 0x170   : > { %v458_v18 = vsel %vm457_vm14, %v456_v17, %v427_v16 }
 0x171   : > { %460 = vst.msk [vmem:[%s160_s28] sm:$0x3] %vm459_vm15, %v458_v18 }
 0x172   : > { %699 = shalt.err (!%p696_p6)
}
 0x173   : > { %s700_s24 = scalar_lea.hbm %s940_s30, 32  ;;  %s704_s15 = scalar_lea.hbm %s990_s1, 64 }
 0x174   : > { %p701_p4 = scmp.ne.s32.totalorder %s940_s30, %s700_s24  ;;  %p705_p1 = scmp.lt.u32.totalorder %s940_s30, %s990_s1 }
 0x175   : > { %p706_p2 = scmp.lt.u32.totalorder %s704_s15, %s700_s24  ;;  %p708_p8 = scmp.lt.u32.totalorder %s700_s24, %s940_s30 }
 0x176   : > { %p702_p10 = pnand %p701_p4, %p999_p9 }
 0x177   : > { %p707_p5 = por %p706_p2, %p705_p1 }
 0x178   : > { %p703_p12 = pneg %p702_p10 }
 0x179   : > { %p709_p11 = por %p708_p8, %p707_p5 }
 0x17b   : > { %p710_p0 = pnand %p709_p11, %p703_p12 }
 0x17d   : > { %713 = shalt.err (!%p710_p0)
}
 0x17e   : > { %578 = dma.vmem_to_hbm [thread:$0]  (%p999_p9), %s942_s18, 32, %s940_s30, %s462_s2  }
 0x17f PF: > { %s489_s22 = sand.u32 1, %s748_s6   ;;  %p1000_p7 = scmp.ne.s32.totalorder %s995_s21, 0 }
 0x180   : > { %p1001_p13 = scmp.ge.s32.totalorder %s768_s11, 2  ;;  %s490_s23 = scalar_lea.sflag [#allocation4], %s489_s22 }
 0x182   : > { %p585_p3 = pnand %p1001_p13, %p1000_p7 }
 0x184   : > { %743 = dma.done.wait (!%p585_p3), %s490_s23, 32  }
 0x185   : > { %745 = vsyncadd (!%p585_p3), %s490_s23, 4294967264  ;;  %s17_s11 = sadd.s32 1, %s768_s11   ;;  %s1002_s6 = smov %s752_s7 }
 0x186   : > { %p14_p6 = scmp.ge.s32.totalorder %s17_s11, 4   ;;  %s1003_s7 = smov %s756_s8 }
 0x187   : > { %s1004_s8 = smov %s856_s20  ;;  %s1005_s9 = smov %s764_s10 }
 0x188   : > { %s1006_s10 = smov %s1008_s14  ;;  %16 = sbr.rel (!%p14_p6) target bundleno = 6 (0x6), region = 69 }
 0x18f   :  { %495 = vsyncpa [#allocation3], 1 }
 0x190   :  { %497 = vsyncpa [#allocation3 + $0x1], 1 }
 0x191   :  { %498 = vsyncpa [#allocation4], 1 }
 0x192   :  { %500 = vsyncpa [#allocation4 + $0x1], 1 }

</bundles_post_ra>
